<compile_context>
chip_gen: v6e
topology: v6e:2x2x1
jax: 0.10.0
libtpu: 0.0.40
codegen_flags: <defaults>
</compile_context>

<pallas_src>
import jax
import jax.numpy as jnp
from jax.experimental import pallas as pl
from jax.experimental.pallas import tpu as pltpu


def _round_up(x, mult):
    return ((x + mult - 1) // mult) * mult


def _fc_relu_kernel(x_ref, w_ref, b_ref, o_ref):
    # x: [TILE_M, K], w: [K, N_pad] (pre-transposed), b: [1, N_pad]
    y = jnp.dot(x_ref[...], w_ref[...], preferred_element_type=jnp.float32)
    y = y + b_ref[...]                       # bias add + ReLU in f32
    o_ref[...] = jnp.maximum(y, 0.0).astype(o_ref.dtype)


def prepare_fc_encoder_params(weight, bias):
    """One-time parameter prep (init-time, NOT per forward call).

    weight: [out_dim, obs_dim] (PyTorch convention) -> padded [obs_dim, N_pad]
    bias:   [out_dim]                               -> padded [1, N_pad]
    N is padded to a multiple of 128 so kernel stores are lane-dense; the
    padded output columns are exactly zero (zero weight cols, zero bias) and
    get sliced off in the wrapper.
    """
    out_dim, obs_dim = weight.shape
    n_pad = _round_up(out_dim, 128)
    w_t = jnp.zeros((obs_dim, n_pad), dtype=weight.dtype).at[:, :out_dim].set(weight.T)
    b_p = jnp.zeros((1, n_pad), dtype=jnp.float32).at[0, :out_dim].set(
        bias.astype(jnp.float32))
    return w_t, b_p, out_dim


def fc_encoder_forward(x, w_t_pad, b_pad, out_dim, matmul_dtype=None):
    """x: [batch, stack, obs_dim]; w_t_pad: [obs_dim, N_pad]; b_pad: [1, N_pad].

    Returns [batch, stack, out_dim] = relu(x @ W^T + b).
    matmul_dtype: optionally jnp.bfloat16 on v6e/v7x (f32 accumulation kept).
    """
    batch, stack, obs_dim = x.shape
    out_dtype = x.dtype
    m = batch * stack
    k = obs_dim
    n_pad = w_t_pad.shape[1]

    # M tiling: multiple of 8 sublanes, capped at 256 rows per tile so the
    # double-buffered x/out tiles stay well under the v7x 32 MiB scoped VMEM.
    tile_m = min(_round_up(m, 8), 256)
    m_pad = _round_up(m, tile_m)
    grid_m = m_pad // tile_m

    x2d = x.reshape(m, k)
    if m_pad != m:
        x2d = jnp.pad(x2d, ((0, m_pad - m), (0, 0)))

    if matmul_dtype is not None:
        x2d = x2d.astype(matmul_dtype)
        w_t_pad = w_t_pad.astype(matmul_dtype)

    itemsize = jnp.dtype(x2d.dtype).itemsize
    cost = pl.CostEstimate(
        flops=2 * m_pad * k * n_pad,
        transcendentals=0,
        bytes_accessed=(m_pad * k * itemsize          # x
                        + k * n_pad * itemsize        # w
                        + n_pad * 4                   # bias
                        + m_pad * n_pad * jnp.dtype(out_dtype).itemsize),
    )

    out = pl.pallas_call(
        _fc_relu_kernel,
        out_shape=jax.ShapeDtypeStruct((m_pad, n_pad), out_dtype),
        grid_spec=pltpu.PrefetchScalarGridSpec(
            num_scalar_prefetch=0,
            grid=(grid_m,),
            in_specs=[
                pl.BlockSpec((tile_m, k), lambda i: (i, 0)),   # x: tiled over M
                pl.BlockSpec((k, n_pad), lambda i: (0, 0)),    # weight: resident
                pl.BlockSpec((1, n_pad), lambda i: (0, 0)),    # bias: resident
            ],
            out_specs=pl.BlockSpec((tile_m, n_pad), lambda i: (i, 0)),
        ),
        compiler_params=pltpu.CompilerParams(
            dimension_semantics=("parallel",),
            vmem_limit_bytes=32 * 1024 * 1024,
        ),
        cost_estimate=cost,
    )(x2d, w_t_pad, b_pad)

    out = out[:m, :out_dim]
    return out.reshape(batch, stack, out_dim)


def norm_col_init(key, shape, std=1.0):
    """Deterministic replica of ddpg norm_col_init: randn normalized per row."""
    x = jax.random.normal(key, shape, dtype=jnp.float32)
    x = x * (std / jnp.sqrt(jnp.sum(x * x, axis=1, keepdims=True)))
    return x


if __name__ == "__main__":
    key = jax.random.PRNGKey(0)
    k_x, k_w, k_b = jax.random.split(key, 3)

    batch = 2
    stack_frames = 2
    obs_dim = 32     # obs_space[0]
    out_dim = 32

    # Parameters (deterministic in-script init; weight uses norm_col_init(std=1))
    weight = norm_col_init(k_w, (out_dim, obs_dim), std=1.0)   # [out_dim, obs_dim]
    bias = jnp.zeros((out_dim,), dtype=jnp.float32)

    # One-time prep (pre-transpose + lane pad) — analog of module __init__.
    w_t_pad, b_pad, n_out = prepare_fc_encoder_params(weight, bias)

    x = jax.random.normal(k_x, (batch, stack_frames, obs_dim), dtype=jnp.float32)

    y = fc_encoder_forward(x, w_t_pad, b_pad, n_out)   # f32 path (exact check)
    y = jax.block_until_ready(y)

    # Reference check in plain JAX
    ref = jnp.maximum(jnp.einsum("bso,no->bsn", x, weight) + bias, 0.0)
    assert y.shape == (batch, stack_frames, out_dim)
    assert jnp.allclose(y, ref, atol=1e-5, rtol=1e-5)

    # Also exercise the bf16-operand path (looser tolerance; for v6e/v7x MXU).
    y_bf16 = fc_encoder_forward(x, w_t_pad, b_pad, n_out, matmul_dtype=jnp.bfloat16)
    y_bf16 = jax.block_until_ready(y_bf16)
    assert jnp.allclose(y_bf16, ref, atol=3e-2, rtol=3e-2)

    print("KERNEL_OK")
</pallas_src>

<mosaic_0001>
module attributes {stable_mosaic.version = 11 : i64} {
  func.func @_fc_relu_kernel(%arg0: i32, %arg1: memref<8x32xf32, #tpu.memory_space<vmem>>, %arg2: memref<32x128xf32, #tpu.memory_space<vmem>>, %arg3: memref<1x128xf32, #tpu.memory_space<vmem>>, %arg4: memref<8x128xf32, #tpu.memory_space<vmem>>) attributes {dimension_semantics = [#tpu.dimension_semantics<parallel>], iteration_bounds = array<i64: 1>, scalar_prefetch = 0 : i64, scratch_operands = 0 : i64, tpu.core_type = #tpu.core_type<tc>, window_params = [{transform_indices = @transform_0, window_bounds = array<i64: 8, 32>}, {pipeline_mode = #tpu.pipeline_mode<synchronous>, transform_indices = @transform_1, window_bounds = array<i64: 32, 128>}, {pipeline_mode = #tpu.pipeline_mode<synchronous>, transform_indices = @transform_2, window_bounds = array<i64: 1, 128>}, {transform_indices = @transform_3, window_bounds = array<i64: 8, 128>}]} {
    %c0 = arith.constant 0 : index
    %c0_0 = arith.constant 0 : index
    %0 = vector.load %arg1[%c0, %c0_0] : memref<8x32xf32, #tpu.memory_space<vmem>>, vector<8x32xf32>
    %c0_1 = arith.constant 0 : index
    %c0_2 = arith.constant 0 : index
    %1 = vector.load %arg2[%c0_1, %c0_2] : memref<32x128xf32, #tpu.memory_space<vmem>>, vector<32x128xf32>
    %cst = arith.constant dense<0.000000e+00> : vector<8x128xf32>
    %2 = tpu.matmul %0, %1, %cst {dimension_numbers = #tpu.dot_dimension_numbers<[1], [0], [0], [1], [0, 0, 1, 1], [], []>} : vector<8x32xf32>, vector<32x128xf32>, vector<8x128xf32> -> vector<8x128xf32>
    %c0_3 = arith.constant 0 : index
    %c0_4 = arith.constant 0 : index
    %3 = vector.load %arg3[%c0_3, %c0_4] : memref<1x128xf32, #tpu.memory_space<vmem>>, vector<1x128xf32>
    %4 = vector.broadcast %3 : vector<1x128xf32> to vector<8x128xf32>
    %5 = arith.addf %2, %4 : vector<8x128xf32>
    %cst_5 = arith.constant 0.000000e+00 : f32
    %6 = vector.broadcast %cst_5 : f32 to vector<8x128xf32>
    %7 = arith.maximumf %5, %6 : vector<8x128xf32>
    %c0_6 = arith.constant 0 : index
    %c0_7 = arith.constant 0 : index
    %8 = vector.load %arg4[%c0_6, %c0_7] : memref<8x128xf32, #tpu.memory_space<vmem>>, vector<8x128xf32>
    tpu.vector_store %arg4[%c0_6, %c0_7], %7 {strides = array<i32>} : memref<8x128xf32, #tpu.memory_space<vmem>>, vector<8x128xf32>,
    return
  }
  func.func @transform_0(%arg0: i32) -> (i32, i32) {
    %c0_i32 = arith.constant 0 : i32
    %c0_i32_0 = arith.constant 0 : i32
    return %arg0, %c0_i32 : i32, i32
  }
  func.func @transform_1(%arg0: i32) -> (i32, i32) {
    %c0_i32 = arith.constant 0 : i32
    %c0_i32_0 = arith.constant 0 : i32
    %c0_i32_1 = arith.constant 0 : i32
    return %c0_i32, %c0_i32_0 : i32, i32
  }
  func.func @transform_2(%arg0: i32) -> (i32, i32) {
    %c0_i32 = arith.constant 0 : i32
    %c0_i32_0 = arith.constant 0 : i32
    %c0_i32_1 = arith.constant 0 : i32
    return %c0_i32, %c0_i32_0 : i32, i32
  }
  func.func @transform_3(%arg0: i32) -> (i32, i32) {
    %c0_i32 = arith.constant 0 : i32
    %c0_i32_0 = arith.constant 0 : i32
    return %arg0, %c0_i32 : i32, i32
  }
}

</mosaic_0001>

<bundles_post_ra>
// kernel: tpu_custom_call.1
= control target key start
LH: loop header
LB: loop body
LE: loop exit
PB: predicated region body
PF: predicated region fallthrough
CT: control target
= control target key end

     0   :  { %8 = vsyncpa [#allocation3], 0  ;;  %s275_s0 = inlined_call_operand.hbm [shape: f32[8,32], index: 0, kind: input, shape index: {}]   ;;  %s276_s1 = inlined_call_operand.hbm [shape: f32[32,128], index: 1, kind: input, shape index: {}]   ;;  %s277_s2 = inlined_call_operand.vmem [shape: f32[1,128], index: 2, kind: input, shape index: {}]   ;;  %s278_s3 = inlined_call_operand.hbm [shape: f32[8,128], index: 3, kind: output, shape index: {}]  }
   0x1   :  { %9 = vsyncpa [#allocation6], 0 }
   0x2   :  { %10 = vsyncpa [#allocation4], 0  ;;  %s236_s12 = smov [#allocation2]   ;;  %s237_s14 = smov [#allocation5]  }
   0x3   :  { %s17_s13 = sshll.u32 %s236_s12, 4  ;;  %s26_s15 = sshll.u32 %s237_s14, 4  ;;  %s18_s13 = int_to_ptr.vmem [resolvable:$true] %s17_s13  ;;  %s27_s15 = int_to_ptr.vmem [resolvable:$true] %s26_s15 }
   0x4   :  { %s178_s16 = scalar_lea.vmem %s18_s13, 128  ;;  %p183_p1 = scmp.lt.s32.totalorder %s18_s13, %s18_s13 }
   0x5   :  { %p179_p0 = scmp.ne.s32.totalorder %s18_s13, %s178_s16  ;;  %p184_p2 = scmp.lt.s32.totalorder %s178_s16, %s178_s16 }
   0x7   :  { %p185_p3 = por %p184_p2, %p183_p1 }
   0x9   :  { %p186_p4 = pnand %p185_p3, %p179_p0 }
   0xb   :  { %189 = shalt.err (!%p186_p4)
}
   0xc   :  { %20 = dma.hbm_to_vmem [thread:$0]  %s275_s0, 128, %s18_s13, [#allocation3]  }
   0xd   :  { %s198_s19 = scalar_lea.vmem %s27_s15, 512  ;;  %p203_p6 = scmp.lt.s32.totalorder %s27_s15, %s27_s15 }
   0xe   :  { %p199_p5 = scmp.ne.s32.totalorder %s27_s15, %s198_s19  ;;  %p204_p7 = scmp.lt.s32.totalorder %s198_s19, %s198_s19 }
  0x10   :  { %p205_p8 = por %p204_p7, %p203_p6 }
  0x12   :  { %p206_p9 = pnand %p205_p8, %p199_p5 }
  0x14   :  { %209 = shalt.err (!%p206_p9)
}
  0x15   :  { %s238_s20 = smov 128   ;;  %s239_s21 = smov 8  }
  0x16   :  { %32 = dma.hbm_to_vmem [thread:$0]  %s276_s1, 512, %s27_s15, [#allocation6], %s238_s20, %s238_s20, %s239_s21  }
  0x17   :  { %230 = dma.done.wait [#allocation3], 128  }
  0x18   :  { %231 = vsyncadd [#allocation3], 4294967168 }
  0x19   :  { %232 = dma.done.wait [#allocation6], 512  }
  0x1a   :  { %233 = vsyncadd [#allocation6], 4294966784  ;;  %v240_v0 = vmov 0.0   ;;  %vm241_vm0 = vmmov 0   ;;  %v45_v1 = vld [vmem:[#allocation5 + $0x18] sm:$0xff]  ;;  %v44_v2 = vld [vmem:[#allocation5 + $0x10] sm:$0xff] }
  0x1b   :  { %152 = vmatprep.subr.mxu0 %v240_v0  ;;  %160 = vmatprep.mubr.msk.f32.mxu0 %vm241_vm0, %v240_v0  ;;  %v43_v3 = vld [vmem:[#allocation5 + $0x8] sm:$0xff]  ;;  %v42_v4 = vld [vmem:[#allocation5] sm:$0xff]  ;;  %v41_v5 = vld [vmem:[#allocation2] sm:$0xff]  ;;  %vm53_vm1 = vcmask 261120   ;;  %s242_s24 = smov [#allocation7]  }
  0x1c   :  { %153 = vmatpush3.msra.mxu0 %v45_v1  ;;  %v145_v6 = vld [vmem:[%s277_s2] ss:$0 sm:$0xff]  ;;  %s135_s25 = sshll.u32 %s242_s24, 4  ;;  %s136_s25 = int_to_ptr.vmem [resolvable:$true] %s135_s25 }
  0x1d   :  { %154 = vmatprep.subr.mxu0 %v240_v0  ;;  %s210_s26 = scalar_lea.vmem %s136_s25, 128  ;;  %p215_p11 = scmp.lt.s32.totalorder %s136_s25, %s136_s25 }
  0x1e   :  { %155 = vmatpush3.msra.mxu0 %v44_v2  ;;  %p211_p10 = scmp.ne.s32.totalorder %s136_s25, %s210_s26  ;;  %p216_p12 = scmp.lt.s32.totalorder %s210_s26, %s210_s26 }
  0x1f   :  { %156 = vmatprep.subr.mxu0 %v240_v0 }
  0x20   :  { %157 = vmatpush3.msra.mxu0 %v43_v3  ;;  %p217_p13 = por %p216_p12, %p215_p11 }
  0x21   :  { %158 = vmatprep.subr.mxu0 %v240_v0 }
  0x22   :  { %159 = vmatpush3.msra.mxu0 %v42_v4  ;;  %p218_p0 = pnand %p217_p13, %p211_p10 }
  0x23   :  { %161 = vmatmul.mubr.msk.f32.vlgmr.msra.gmra.mxu0 %vm53_vm1, %v41_v5 }
  0xe3   :  { %v123_v7 = vpop.f32.mrf.mxu0 }
  0xe4   :  { %v124_v8 = vadd.f32 %v145_v6, %v123_v7 }
  0xe5   :  { %v162_v9 = vpop.f32.mrf.mxu0 }
  0xe6   :  { %v127_v10 = vmax.f32 %v124_v8, 0.0 }
  0xe8   :  { %128 = vst [vmem:[#allocation7] sm:$0xff] %v127_v10 }
  0xe9   :  { %221 = shalt.err (!%p218_p0)
}
  0xea   :  { %138 = dma.vmem_to_hbm [thread:$0]  %s136_s25, 128, %s278_s3, [#allocation4]  }
  0xeb   :  { %234 = dma.done.wait [#allocation4], 128  }
  0xec   :  { %235 = vsyncadd [#allocation4], 4294967168 }
  0xed   :  { %142 = vsyncpa [#allocation3], 1 }
  0xee   :  { %143 = vsyncpa [#allocation6], 1 }
  0xef   :  { %144 = vsyncpa [#allocation4], 1 }

</bundles_post_ra>
